<compile_context>
chip_gen: v6e
topology: v6e:2x2x1
jax: 0.10.0
libtpu: 0.0.40
codegen_flags: <defaults>
</compile_context>

<pallas_src>
import jax
import jax.numpy as jnp
from jax import lax
from jax.experimental import pallas as pl
from jax.experimental.pallas import tpu as pltpu

_IN = 32      # input features
_HID = 64     # hidden features
_TB_MAX = 2048  # batch-row tile (multiple of 128); working set << VMEM on all chips


def _disc_kernel(x_ref, w1_ref, b1_ref, w2_ref, b2_ref, o_ref):
    x = x_ref[...]                                   # (TB, 32), batch-major tile

    # Linear(32 -> 64), transposed so batch sits in lanes: (64, TB)
    hT = lax.dot_general(
        w1_ref[...], x,                              # (32, 64) x (TB, 32)
        dimension_numbers=(((0,), (1,)), ((), ())),
        preferred_element_type=jnp.float32,
    ) + b1_ref[...]                                  # b1: (64, 1) broadcasts over lanes

    # LeakyReLU(0.2): one vmul + vmax per vreg
    hT = jnp.maximum(hT, 0.2 * hT)

    # Linear(64 -> 1), transposed: (1, TB)
    zT = lax.dot_general(
        w2_ref[...], hT,                             # (64, 1) x (64, TB)
        dimension_numbers=(((0,), (0,)), ((), ())),
        preferred_element_type=jnp.float32,
    ) + b2_ref[...]                                  # b2: (1, 1)

    # Sigmoid: exp and approx reciprocal both run on the EUP slot
    o_ref[...] = pl.reciprocal(1.0 + jnp.exp(-zT), approx=True).astype(o_ref.dtype)


def _round_up(n, m):
    return ((n + m - 1) // m) * m


def discriminator_code(x, w1, b1, w2, b2):
    """x: (B, 32) float32 -> (B, 1) float32."""
    B = x.shape[0]
    TB = min(_TB_MAX, _round_up(max(B, 1), 128))     # lane-dense tile, multiple of 128
    B_pad = _round_up(B, TB)
    if B_pad != B:
        x = jnp.pad(x, ((0, B_pad - B), (0, 0)))

    out_t = pl.pallas_call(
        _disc_kernel,
        out_shape=jax.ShapeDtypeStruct((1, B_pad), jnp.float32),
        grid_spec=pltpu.PrefetchScalarGridSpec(
            num_scalar_prefetch=0,
            grid=(B_pad // TB,),
            in_specs=[
                pl.BlockSpec((TB, _IN), lambda i: (i, 0)),     # x tile (pipelined)
                pl.BlockSpec((_IN, _HID), lambda i: (0, 0)),   # w1 resident in VMEM
                pl.BlockSpec((_HID, 1), lambda i: (0, 0)),     # b1 resident
                pl.BlockSpec((_HID, 1), lambda i: (0, 0)),     # w2 resident
                pl.BlockSpec((1, 1), lambda i: (0, 0)),        # b2 resident
            ],
            out_specs=pl.BlockSpec((1, TB), lambda i: (0, i)),  # lane-dense store
        ),
        compiler_params=pltpu.CompilerParams(
            dimension_semantics=("parallel",),
        ),
    )(x, w1, b1, w2, b2)

    return out_t[:, :B].reshape(B, 1)


def init_params(key):
    """PyTorch-style nn.Linear init: U(-1/sqrt(fan_in), 1/sqrt(fan_in))."""
    k1, k2, k3, k4 = jax.random.split(key, 4)
    lim1 = 1.0 / jnp.sqrt(float(_IN))
    lim2 = 1.0 / jnp.sqrt(float(_HID))
    # Layouts chosen for the transposed (batch-in-lanes) kernel:
    w1 = jax.random.uniform(k1, (_IN, _HID), jnp.float32, -lim1, lim1)   # (32, 64)
    b1 = jax.random.uniform(k2, (_HID, 1), jnp.float32, -lim1, lim1)     # (64, 1)
    w2 = jax.random.uniform(k3, (_HID, 1), jnp.float32, -lim2, lim2)     # (64, 1)
    b2 = jax.random.uniform(k4, (1, 1), jnp.float32, -lim2, lim2)        # (1, 1)
    return w1, b1, w2, b2


def reference(x, w1, b1, w2, b2):
    h = x @ w1 + b1.T
    h = jnp.maximum(h, 0.2 * h)
    z = h @ w2 + b2
    return jax.nn.sigmoid(z)


if __name__ == "__main__":
    key = jax.random.PRNGKey(0)
    kx, kp = jax.random.split(key)

    batch = 8
    x = jax.random.normal(kx, (batch, _IN), jnp.float32)
    w1, b1, w2, b2 = init_params(kp)

    out = discriminator_code(x, w1, b1, w2, b2)
    out = jax.block_until_ready(out)

    ref = reference(x, w1, b1, w2, b2)
    assert out.shape == (batch, 1), out.shape
    # Slightly relaxed tolerance because of the EUP approx reciprocal in sigmoid.
    assert jnp.allclose(out, ref, atol=2e-3, rtol=2e-3), (out, ref)

    print("KERNEL_OK")
</pallas_src>

<mosaic_0001>
module attributes {stable_mosaic.version = 11 : i64} {
  func.func @_disc_kernel(%arg0: i32, %arg1: memref<128x32xf32, #tpu.memory_space<vmem>>, %arg2: memref<32x64xf32, #tpu.memory_space<vmem>>, %arg3: memref<64x1xf32, #tpu.memory_space<vmem>>, %arg4: memref<64x1xf32, #tpu.memory_space<vmem>>, %arg5: memref<1x1xf32, #tpu.memory_space<vmem>>, %arg6: memref<1x128xf32, #tpu.memory_space<vmem>>) attributes {dimension_semantics = [#tpu.dimension_semantics<parallel>], iteration_bounds = array<i64: 1>, scalar_prefetch = 0 : i64, scratch_operands = 0 : i64, tpu.core_type = #tpu.core_type<tc>, window_params = [{transform_indices = @transform_0, window_bounds = array<i64: 128, 32>}, {pipeline_mode = #tpu.pipeline_mode<synchronous>, transform_indices = @transform_1, window_bounds = array<i64: 32, 64>}, {pipeline_mode = #tpu.pipeline_mode<synchronous>, transform_indices = @transform_2, window_bounds = array<i64: 64, 1>}, {pipeline_mode = #tpu.pipeline_mode<synchronous>, transform_indices = @transform_3, window_bounds = array<i64: 64, 1>}, {pipeline_mode = #tpu.pipeline_mode<synchronous>, transform_indices = @transform_4, window_bounds = array<i64: 1, 1>}, {transform_indices = @transform_5, window_bounds = array<i64: 1, 128>}]} {
    %c0 = arith.constant 0 : index
    %c0_0 = arith.constant 0 : index
    %0 = vector.load %arg1[%c0, %c0_0] : memref<128x32xf32, #tpu.memory_space<vmem>>, vector<128x32xf32>
    %c0_1 = arith.constant 0 : index
    %c0_2 = arith.constant 0 : index
    %1 = vector.load %arg2[%c0_1, %c0_2] : memref<32x64xf32, #tpu.memory_space<vmem>>, vector<32x64xf32>
    %cst = arith.constant dense<0.000000e+00> : vector<64x128xf32>
    %2 = tpu.matmul %1, %0, %cst {dimension_numbers = #tpu.dot_dimension_numbers<[0], [1], [1], [0], [0, 1, 1, 0], [], []>} : vector<32x64xf32>, vector<128x32xf32>, vector<64x128xf32> -> vector<64x128xf32>
    %c0_3 = arith.constant 0 : index
    %c0_4 = arith.constant 0 : index
    %3 = vector.load %arg3[%c0_3, %c0_4] : memref<64x1xf32, #tpu.memory_space<vmem>>, vector<64x1xf32>
    %4 = vector.broadcast %3 : vector<64x1xf32> to vector<64x128xf32>
    %5 = arith.addf %2, %4 : vector<64x128xf32>
    %cst_5 = arith.constant 2.000000e-01 : f32
    %6 = vector.broadcast %cst_5 : f32 to vector<64x128xf32>
    %7 = arith.mulf %6, %5 : vector<64x128xf32>
    %8 = arith.maximumf %5, %7 : vector<64x128xf32>
    %c0_6 = arith.constant 0 : index
    %c0_7 = arith.constant 0 : index
    %9 = vector.load %arg4[%c0_6, %c0_7] : memref<64x1xf32, #tpu.memory_space<vmem>>, vector<64x1xf32>
    %cst_8 = arith.constant dense<0.000000e+00> : vector<1x128xf32>
    %10 = tpu.matmul %9, %8, %cst_8 {dimension_numbers = #tpu.dot_dimension_numbers<[0], [0], [1], [1], [0, 1, 1, 1], [], []>} : vector<64x1xf32>, vector<64x128xf32>, vector<1x128xf32> -> vector<1x128xf32>
    %c0_9 = arith.constant 0 : index
    %c0_10 = arith.constant 0 : index
    %11 = vector.load %arg5[%c0_9, %c0_10] : memref<1x1xf32, #tpu.memory_space<vmem>>, vector<1x1xf32>
    %12 = vector.broadcast %11 : vector<1x1xf32> to vector<1x128xf32>
    %13 = arith.addf %10, %12 : vector<1x128xf32>
    %cst_11 = arith.constant 0.000000e+00 : f32
    %14 = vector.broadcast %cst_11 : f32 to vector<1x128xf32>
    %15 = arith.subf %14, %13 : vector<1x128xf32>
    %16 = math.exp %15 : vector<1x128xf32>
    %cst_12 = arith.constant 1.000000e+00 : f32
    %17 = vector.broadcast %cst_12 : f32 to vector<1x128xf32>
    %18 = arith.addf %17, %16 : vector<1x128xf32>
    %19 = tpu.reciprocal %18 {approx = true} : vector<1x128xf32> -> vector<1x128xf32>
    %c0_13 = arith.constant 0 : index
    %c0_14 = arith.constant 0 : index
    %20 = vector.load %arg6[%c0_13, %c0_14] : memref<1x128xf32, #tpu.memory_space<vmem>>, vector<1x128xf32>
    tpu.vector_store %arg6[%c0_13, %c0_14], %19 {strides = array<i32>} : memref<1x128xf32, #tpu.memory_space<vmem>>, vector<1x128xf32>,
    return
  }
  func.func @transform_0(%arg0: i32) -> (i32, i32) {
    %c0_i32 = arith.constant 0 : i32
    %c0_i32_0 = arith.constant 0 : i32
    return %arg0, %c0_i32 : i32, i32
  }
  func.func @transform_1(%arg0: i32) -> (i32, i32) {
    %c0_i32 = arith.constant 0 : i32
    %c0_i32_0 = arith.constant 0 : i32
    %c0_i32_1 = arith.constant 0 : i32
    return %c0_i32, %c0_i32_0 : i32, i32
  }
  func.func @transform_2(%arg0: i32) -> (i32, i32) {
    %c0_i32 = arith.constant 0 : i32
    %c0_i32_0 = arith.constant 0 : i32
    %c0_i32_1 = arith.constant 0 : i32
    return %c0_i32, %c0_i32_0 : i32, i32
  }
  func.func @transform_3(%arg0: i32) -> (i32, i32) {
    %c0_i32 = arith.constant 0 : i32
    %c0_i32_0 = arith.constant 0 : i32
    %c0_i32_1 = arith.constant 0 : i32
    return %c0_i32, %c0_i32_0 : i32, i32
  }
  func.func @transform_4(%arg0: i32) -> (i32, i32) {
    %c0_i32 = arith.constant 0 : i32
    %c0_i32_0 = arith.constant 0 : i32
    %c0_i32_1 = arith.constant 0 : i32
    return %c0_i32, %c0_i32_0 : i32, i32
  }
  func.func @transform_5(%arg0: i32) -> (i32, i32) {
    %c0_i32 = arith.constant 0 : i32
    %c0_i32_0 = arith.constant 0 : i32
    return %c0_i32, %arg0 : i32, i32
  }
}

</mosaic_0001>

<bundles_post_ra>
// kernel: tpu_custom_call.1
= control target key start
LH: loop header
LB: loop body
LE: loop exit
PB: predicated region body
PF: predicated region fallthrough
CT: control target
= control target key end

     0   :  { %s802_s0 = inlined_call_operand.vmem [shape: f32[128,32], index: 0, kind: input, shape index: {}]   ;;  %s803_s1 = inlined_call_operand.vmem [shape: f32[32,64], index: 1, kind: input, shape index: {}]   ;;  %s804_s2 = inlined_call_operand.vmem [shape: f32[64,1], index: 2, kind: input, shape index: {}]   ;;  %s805_s3 = inlined_call_operand.vmem [shape: f32[64,1], index: 3, kind: input, shape index: {}]   ;;  %s806_s4 = inlined_call_operand.<no memory space> [shape: f32[1,1], index: 4, kind: input, shape index: {}]   ;;  %s807_s5 = inlined_call_operand.hbm [shape: f32[1,128], index: 5, kind: output, shape index: {}]  }
   0x1   :  { %v10_v0 = vstv %s806_s4 }
   0x2   :  { %11 = vst [vmem:[#allocation2] sm:$0x1] %v10_v0 }
   0x3   :  { %v39_v1 = vld [vmem:[%s803_s1] sm:$0xff]  ;;  %vm123_vm0 = vcmask 261120   ;;  %v38_v2 = vld [vmem:[%s802_s0 + $0x78] sm:$0xff]  ;;  %v37_v3 = vld [vmem:[%s802_s0 + $0x70] sm:$0xff] }
   0x4   :  { %91 = vxpose.xlu0.b32.start [1/4] (short) (narrow) %v39_v1, 64  ;;  %v40_v4 = vld [vmem:[%s803_s1 + $0x8] sm:$0xff]  ;;  %519 = vmatprep.subr.msk.mxu0 %vm123_vm0, %v38_v2  ;;  %v41_v6 = vld [vmem:[%s803_s1 + $0x10] sm:$0xff] }
   0x5   :  { %520 = vmatpush3.xpose.msk.msra.mxu0 %vm123_vm0, %v38_v2  ;;  %v36_v5 = vld [vmem:[%s802_s0 + $0x68] sm:$0xff] }
   0x6   :  { %521 = vmatprep.subr.msk.mxu0 %vm123_vm0, %v37_v3 }
   0x8   :  { %92 = vxpose.xlu0.b32.cont [2/4] (short) (narrow) %v40_v4, 64 }
   0x9   :  { %12 = vsyncpa [#allocation4], 0  ;;  %522 = vmatpush3.xpose.msk.msra.mxu0 %vm123_vm0, %v37_v3  ;;  %v35_v7 = vld [vmem:[%s802_s0 + $0x60] sm:$0xff]  ;;  %v42_v8 = vld [vmem:[%s803_s1 + $0x18] sm:$0xff]  ;;  %v614_v12 = vmov 0   ;;  %v615_v47 = vmov 0.0  }
   0xa   :  { %523 = vmatprep.subr.msk.mxu0 %vm123_vm0, %v36_v5  ;;  %v34_v9 = vld [vmem:[%s802_s0 + $0x58] sm:$0xff]  ;;  %v33_v10 = vld [vmem:[%s802_s0 + $0x50] sm:$0xff]  ;;  %v32_v11 = vld [vmem:[%s802_s0 + $0x48] sm:$0xff]  ;;  %586 = vset.pattern.permute.xlu1 %v614_v12  ;;  %vm616_vm1 = vmmov 0   ;;  %vm367_vm2 = vcmask 523264  }
   0xb   :  { %v31_v13 = vld [vmem:[%s802_s0 + $0x40] sm:$0xff]  ;;  %v50_v14 = vld [vmem:[%s804_s2 + $0x38] sm:$0xff]  ;;  %v49_v15 = vld [vmem:[%s804_s2 + $0x30] sm:$0xff]  ;;  %563 = vmatprep.subr.mxu1 %v615_v47  ;;  %579 = vmatprep.mubr.msk.f32.mxu1 %vm616_vm1, %v615_v47 }
   0xc   :  { %93 = vxpose.xlu0.b32.cont [3/4] (short) (narrow) %v41_v6, 64  ;;  %88 = vperm.xlu1 %586, %v50_v14   ;;  %v30_v16 = vld [vmem:[%s802_s0 + $0x38] sm:$0xff]  ;;  %v48_v17 = vld [vmem:[%s804_s2 + $0x28] sm:$0xff]  ;;  %v29_v18 = vld [vmem:[%s802_s0 + $0x30] sm:$0xff] }
   0xd   :  { %524 = vmatpush3.xpose.msk.msra.mxu0 %vm123_vm0, %v36_v5  ;;  %v47_v19 = vld [vmem:[%s804_s2 + $0x20] sm:$0xff]  ;;  %v28_v20 = vld [vmem:[%s802_s0 + $0x28] sm:$0xff]  ;;  %v45_v21 = vld [vmem:[%s804_s2 + $0x10] sm:$0xff] }
   0xe   :  { %525 = vmatprep.subr.msk.mxu0 %vm123_vm0, %v35_v7  ;;  %v27_v22 = vld [vmem:[%s802_s0 + $0x20] sm:$0xff]  ;;  %v44_v23 = vld [vmem:[%s804_s2 + $0x8] sm:$0xff]  ;;  %v26_v24 = vld [vmem:[%s802_s0 + $0x18] sm:$0xff] }
   0xf   :  { %v43_v25 = vld [vmem:[%s804_s2] sm:$0xff]  ;;  %v25_v26 = vld [vmem:[%s802_s0 + $0x10] sm:$0xff]  ;;  %v24_v27 = vld [vmem:[%s802_s0 + $0x8] sm:$0xff] }
  0x10   :  { %94 = vxpose.xlu0.b32.end [4/4] (short) (narrow) %v42_v8, 64  ;;  %83 = vperm.xlu1 %586, %v49_v15   ;;  %v23_v28 = vld [vmem:[%s802_s0] sm:$0xff]  ;;  %v46_v29 = vld [vmem:[%s804_s2 + $0x18] sm:$0xff]  ;;  %v318_v32 = vld [vmem:[%s805_s3 + $0x8] sm:$0xff] }
  0x11   :  { %526 = vmatpush3.xpose.msk.msra.mxu0 %vm123_vm0, %v35_v7  ;;  %v325_v30 = vld [vmem:[#allocation2] sm:$0x1]  ;;  %v319_v33 = vld [vmem:[%s805_s3 + $0x10] sm:$0xff]  ;;  %v320_v34 = vld [vmem:[%s805_s3 + $0x18] sm:$0xff] }
  0x12   :  { %527 = vmatprep.subr.msk.mxu0 %vm123_vm0, %v34_v9  ;;  %v317_v31 = vld [vmem:[%s805_s3] sm:$0xff]  ;;  %v322_v36 = vld [vmem:[%s805_s3 + $0x28] sm:$0xff]  ;;  %v323_v37 = vld [vmem:[%s805_s3 + $0x30] sm:$0xff] }
  0x13   :  { %v321_v35 = vld [vmem:[%s805_s3 + $0x20] sm:$0xff]  ;;  %v324_v38 = vld [vmem:[%s805_s3 + $0x38] sm:$0xff]  ;;  %s617_s3 = smov [#allocation3]  }
  0x14   :  { %78 = vperm.xlu1 %586, %v48_v17   ;;  %s453_s10 = sshll.u32 %s617_s3, 4  ;;  %s454_s10 = int_to_ptr.vmem [resolvable:$true] %s453_s10 }
  0x15   :  { %528 = vmatpush3.xpose.msk.msra.mxu0 %vm123_vm0, %v34_v9  ;;  %s592_s11 = scalar_lea.vmem %s454_s10, 16  ;;  %s596_s12 = scalar_lea.vmem %s454_s10, 32 }
  0x16   :  { %529 = vmatprep.subr.msk.mxu0 %vm123_vm0, %v33_v10  ;;  %p593_p0 = scmp.ne.s32.totalorder %s454_s10, %s592_s11  ;;  %p597_p1 = scmp.lt.s32.totalorder %s454_s10, %s454_s10 }
  0x17   :  { %p598_p2 = scmp.lt.s32.totalorder %s596_s12, %s592_s11 }
  0x18   :  { %73 = vperm.xlu1 %586, %v47_v19  }
  0x19   :  { %530 = vmatpush3.xpose.msk.msra.mxu0 %vm123_vm0, %v33_v10  ;;  %p599_p3 = por %p598_p2, %p597_p1 }
  0x1a   :  { %531 = vmatprep.subr.msk.mxu0 %vm123_vm0, %v32_v11 }
  0x1b   :  { %p600_p4 = pnand %p599_p3, %p593_p0 }
  0x1c   :  { %63 = vperm.xlu1 %586, %v45_v21  }
  0x1d   :  { %532 = vmatpush3.xpose.msk.msra.mxu0 %vm123_vm0, %v32_v11 }
  0x1e   :  { %533 = vmatprep.subr.msk.mxu0 %vm123_vm0, %v31_v13 }
  0x20   :  { %58 = vperm.xlu1 %586, %v44_v23  }
  0x21   :  { %534 = vmatpush3.xpose.msk.msra.mxu0 %vm123_vm0, %v31_v13 }
  0x22   :  { %535 = vmatprep.subr.msk.mxu0 %vm123_vm0, %v30_v16 }
  0x24   :  { %53 = vperm.xlu1 %586, %v43_v25   ;;  %v331_v25 = vlaneseq }
  0x25   :  { %536 = vmatpush3.xpose.msk.msra.mxu0 %vm123_vm0, %v30_v16 }
  0x26   :  { %537 = vmatprep.subr.msk.mxu0 %vm123_vm0, %v29_v18 }
  0x29   :  { %538 = vmatpush3.xpose.msk.msra.mxu0 %vm123_vm0, %v29_v18 }
  0x2a   :  { %539 = vmatprep.subr.msk.mxu0 %vm123_vm0, %v28_v20 }
  0x2d   :  { %540 = vmatpush3.xpose.msk.msra.mxu0 %vm123_vm0, %v28_v20 }
  0x2e   :  { %541 = vmatprep.subr.msk.mxu0 %vm123_vm0, %v27_v22 }
  0x31   :  { %542 = vmatpush3.xpose.msk.msra.mxu0 %vm123_vm0, %v27_v22 }
  0x32   :  { %543 = vmatprep.subr.msk.mxu0 %vm123_vm0, %v26_v24 }
  0x35   :  { %544 = vmatpush3.xpose.msk.msra.mxu0 %vm123_vm0, %v26_v24 }
  0x36   :  { %545 = vmatprep.subr.msk.mxu0 %vm123_vm0, %v25_v26 }
  0x39   :  { %587 = vset.pattern.permute.xlu0 %v614_v12  ;;  %546 = vmatpush3.xpose.msk.msra.mxu0 %vm123_vm0, %v25_v26  ;;  %v332_v26 = vshrl.u32 %v331_v25, 7 }
  0x3a   :  { %547 = vmatprep.subr.msk.mxu0 %vm123_vm0, %v24_v27 }
  0x3d   :  { %548 = vmatpush3.xpose.msk.msra.mxu0 %vm123_vm0, %v24_v27  ;;  %v333_v27 = vsub.s32 0, %v332_v26 }
  0x3e   :  { %549 = vmatprep.subr.msk.mxu0 %vm123_vm0, %v23_v28 }
  0x41   :  { %550 = vmatpush3.xpose.msk.msra.mxu0 %vm123_vm0, %v23_v28 }
  0x49   :  { %68 = vperm.xlu0 %587, %v46_v29  }
  0x4d   :  { %328 = vperm.xlu0 %587, %v325_v30   ;;  %335 = vxpose.xlu1.b32.start [1/8] (short) (narrow) %v317_v31, 8 }
  0x51   :  { %336 = vxpose.xlu1.b32.cont [2/8] (short) (narrow) %v318_v32, 8 }
  0x55   :  { %337 = vxpose.xlu1.b32.cont [3/8] (short) (narrow) %v319_v33, 8 }
  0x59   :  { %338 = vxpose.xlu1.b32.cont [4/8] (short) (narrow) %v320_v34, 8 }
  0x5d   :  { %339 = vxpose.xlu1.b32.cont [5/8] (short) (narrow) %v321_v35, 8 }
  0x61   :  { %340 = vxpose.xlu1.b32.cont [6/8] (short) (narrow) %v322_v36, 8 }
  0x65   :  { %341 = vxpose.xlu1.b32.cont [7/8] (short) (narrow) %v323_v37, 8 }
  0x69   :  { %342 = vxpose.xlu1.b32.end [8/8] (short) (narrow) %v324_v38, 8 }
  0x80   :  { %v107_v39 = vpop.trf.xlu0 }
  0x81   :  { %551 = vmatprep.mubr.msk.f32.mxu0 %vm123_vm0, %v107_v39 }
  0x84   :  { %v108_v40 = vpop.trf.xlu0 }
  0x85   :  { %552 = vmatmul.mubr.msk.f32.vlgmr.msra.gmra.mxu0 %vm123_vm0, %v108_v40 }
  0x87   :  { %v89_v48 = vpop.permute.xlu1 %88 }
  0x88   :  { %v109_v41 = vpop.trf.xlu0 }
  0x89   :  { %554 = vmatprep.mubr.msk.f32.mxu0 %vm123_vm0, %v109_v41 }
  0x8b   :  { %v84_v49 = vpop.permute.xlu1 %83 }
  0x8c   :  { %v110_v42 = vpop.trf.xlu0 }
  0x8d   :  { %555 = vmatmul.mubr.msk.f32.gmra.mxu0 %vm123_vm0, %v110_v42 }
  0x8f   :  { %v79_v51 = vpop.permute.xlu1 %78 }
  0x90   :  { %v111_v43 = vpop.trf.xlu0 }
  0x91   :  { %557 = vmatprep.mubr.msk.f32.mxu0 %vm123_vm0, %v111_v43 }
  0x93   :  { %v74_v54 = vpop.permute.xlu1 %73 }
  0x94   :  { %v112_v44 = vpop.trf.xlu0 }
  0x95   :  { %558 = vmatmul.mubr.msk.f32.gmra.mxu0 %vm123_vm0, %v112_v44 }
  0x97   :  { %v64_v57 = vpop.permute.xlu1 %63 }
  0x98   :  { %v113_v45 = vpop.trf.xlu0 }
  0x99   :  { %560 = vmatprep.mubr.msk.f32.mxu0 %vm123_vm0, %v113_v45 }
  0x9b   :  { %v59_v3 = vpop.permute.xlu1 %58 }
  0x9c   :  { %v114_v46 = vpop.trf.xlu0 }
  0x9d   :  { %561 = vmatmul.mubr.msk.f32.gmra.mxu0 %vm123_vm0, %v114_v46 }
  0x9f   :  { %v54_v14 = vpop.permute.xlu1 %53 }
  0xc4   :  { %v69_v62 = vpop.permute.xlu0 %68 }
  0xc8   :  { %v329_v28 = vpop.permute.xlu0 %328 }
  0xc9   :  { %v351_v24 = vpop.trf.xlu1  ;;  %v334_v29 = vrot.slane %v329_v28, %v333_v27 }
 0x145   :  { %v553_v50 = vpop.f32.mrf.mxu0 }
 0x146   :  { %v268_v11 = vadd.f32 %v553_v50, %v59_v3 }
 0x147   :  { %v262_v52 = vpop.f32.mrf.mxu0 }
 0x148   :  { %v263_v15 = vadd.f32 %v262_v52, %v54_v14  ;;  %v302_v18 = vmul.f32 0.2, %v268_v11 }
 0x14a   :  { %v301_v20 = vmul.f32 0.2, %v263_v15  ;;  %v310_v22 = vmax.f32 %v268_v11, %v302_v18 }
 0x14c   :  { %v309_v23 = vmax.f32 %v263_v15, %v301_v20 }
 0x14d   :  { %v556_v53 = vpop.f32.mrf.mxu0 }
 0x14e   :  { %v278_v4 = vadd.f32 %v556_v53, %v69_v62 }
 0x14f   :  { %v272_v55 = vpop.f32.mrf.mxu0 }
 0x150   :  { %v273_v8 = vadd.f32 %v272_v55, %v64_v57  ;;  %v304_v12 = vmul.f32 0.2, %v278_v4 }
 0x152   :  { %v303_v16 = vmul.f32 0.2, %v273_v8  ;;  %v312_v19 = vmax.f32 %v278_v4, %v304_v12 }
 0x154   :  { %v311_v21 = vmax.f32 %v273_v8, %v303_v16 }
 0x155   :  { %v559_v56 = vpop.f32.mrf.mxu0 }
 0x156   :  { %v288_v60 = vadd.f32 %v559_v56, %v79_v51 }
 0x157   :  { %v282_v58 = vpop.f32.mrf.mxu0 }
 0x158   :  { %v283_v0 = vadd.f32 %v282_v58, %v74_v54  ;;  %v306_v5 = vmul.f32 0.2, %v288_v60 }
 0x15a   :  { %v305_v9 = vmul.f32 0.2, %v283_v0  ;;  %v314_v13 = vmax.f32 %v288_v60, %v306_v5 }
 0x15c   :  { %v313_v17 = vmax.f32 %v283_v0, %v305_v9 }
 0x15d   :  { %v562_v59 = vpop.f32.mrf.mxu0 }
 0x15e   :  { %v298_v61 = vadd.f32 %v562_v59, %v89_v48 }
 0x15f   :  { %v292_v63 = vpop.f32.mrf.mxu0 }
 0x160   :  { %v308_v1 = vmul.f32 0.2, %v298_v61  ;;  %v293_v2 = vadd.f32 %v292_v63, %v84_v49 }
 0x162   :  { %v307_v6 = vmul.f32 0.2, %v293_v2  ;;  %v316_v7 = vmax.f32 %v298_v61, %v308_v1 }
 0x164   :  { %v315_v10 = vmax.f32 %v293_v2, %v307_v6  ;;  %564 = vmatpush3.msra.mxu1 %v316_v7 }
 0x165   :  { %565 = vmatprep.subr.mxu1 %v615_v47 }
 0x166   :  { %566 = vmatpush3.msra.mxu1 %v315_v10 }
 0x167   :  { %567 = vmatprep.subr.mxu1 %v615_v47 }
 0x168   :  { %568 = vmatpush3.msra.mxu1 %v314_v13 }
 0x169   :  { %569 = vmatprep.subr.mxu1 %v615_v47 }
 0x16a   :  { %570 = vmatpush3.msra.mxu1 %v313_v17 }
 0x16b   :  { %571 = vmatprep.subr.mxu1 %v615_v47 }
 0x16c   :  { %572 = vmatpush3.msra.mxu1 %v312_v19 }
 0x16d   :  { %573 = vmatprep.subr.mxu1 %v615_v47 }
 0x16e   :  { %574 = vmatpush3.msra.mxu1 %v311_v21 }
 0x16f   :  { %575 = vmatprep.subr.mxu1 %v615_v47 }
 0x170   :  { %576 = vmatpush3.msra.mxu1 %v310_v22 }
 0x171   :  { %577 = vmatprep.subr.mxu1 %v615_v47 }
 0x172   :  { %578 = vmatpush3.msra.mxu1 %v309_v23 }
 0x173   :  { %580 = vmatmul.mubr.msk.f32.vlgmr.msra.gmra.mxu1 %vm367_vm2, %v351_v24 }
 0x233   :  { %v437_v30 = vpop.f32.mrf.mxu1 }
 0x234   :  { %v438_v31 = vadd.f32 %v437_v30, %v334_v29 }
 0x235   :  { %v581_v32 = vpop.f32.mrf.mxu1 }
 0x236   :  { %v441_v33 = vsub.f32 0.0, %v438_v31 }
 0x238   :  { %v442_v34 = vmul.f32 1.442695, %v441_v33 }
 0x23a   :  { %588 = vpow2.f32 %v442_v34 }
 0x247   :  { %v589_v35 = vpop.eup %588 }
 0x248   :  { %v444_v36 = vadd.f32 1.0, %v589_v35 }
 0x24a   :  { %590 = vrcp.f32 %v444_v36 }
 0x257   :  { %v591_v37 = vpop.eup %590 }
 0x258   :  { %446 = vst [vmem:[#allocation3] sm:$0x1] %v591_v37 }
 0x259   :  { %603 = shalt.err (!%p600_p4)
}
 0x25a   :  { %456 = dma.vmem_to_hbm [thread:$0]  %s454_s10, 16, %s807_s5, [#allocation4]  }
 0x25b   :  { %612 = dma.done.wait [#allocation4], 16  }
 0x25c   :  { %613 = vsyncadd [#allocation4], 4294967280 }
 0x25d   :  { %460 = vsyncpa [#allocation4], 1 }

</bundles_post_ra>
